<compile_context>
chip_gen: v5e
topology: v5e:2x2
jax: 0.10.0
libtpu: 0.0.40
codegen_flags: <defaults>
</compile_context>

<pallas_src>
import functools

import jax
import jax.numpy as jnp
from jax.experimental import pallas as pl
from jax.experimental.pallas import tpu as pltpu


_HBM_TILE_BYTES = 8 << 20  # ~8 MiB of logits per grid step amortizes ~0.35us/step


def _round_up(x, m):
    return -(-int(x) // m) * m


def _round_down(x, m):
    return (int(x) // m) * m


def _vmem_limit_bytes():
    """Generation-aware scoped-VMEM limit (3/4 of physical, capped at 96 MiB)."""
    phys = 64 << 20
    try:
        info = pltpu.get_tpu_info()
        phys = int(getattr(info, "vmem_capacity_bytes", phys))
    except Exception:
        pass
    return min(int(phys * 3 // 4), 96 << 20)


def _focal_from_logpt(logpt, gamma):
    """loss = -(1 - exp(logpt))**gamma * logpt, with cheap gamma fast paths."""
    if gamma == 0.0:
        return -logpt
    pt = jnp.exp(logpt)
    one_m_pt = 1.0 - pt
    if float(gamma).is_integer() and 1.0 <= gamma <= 4.0:
        focal = one_m_pt
        for _ in range(int(gamma) - 1):
            focal = focal * one_m_pt
    else:
        # clamp: pt can round slightly above 1 -> (1-pt) negative -> pow NaN
        focal = jnp.maximum(one_m_pt, 0.0) ** gamma
    return -(focal * logpt)


# --------------------------------------------------------------------------
# Kernel A: 2-D logits (R, C), classes on the lane axis, rows tiled.
# --------------------------------------------------------------------------
def _focal_loss_rows_kernel(x_ref, t_ref, out_ref, *, gamma, n_rows, tile_rows,
                            per_row):
    i = pl.program_id(0)

    x = x_ref[...].astype(jnp.float32)                   # (TR, C)
    t = t_ref[...]                                       # (TR, 1) int32

    # Row validity for the ragged last tile (garbage reads are masked out of
    # the final loss; select does not propagate NaN/Inf from garbage rows).
    row = i * tile_rows + jax.lax.broadcasted_iota(jnp.int32, (tile_rows, 1), 0)
    valid = row < n_rows

    # log_softmax along the class (lane) axis, no full logp temp.
    m = jnp.max(x, axis=-1, keepdims=True)
    lse = jnp.log(jnp.sum(jnp.exp(x - m), axis=-1, keepdims=True)) + m
    # gather(1, target) via a one-hot lane mask (no cross-lane gather on TPU).
    col = jax.lax.broadcasted_iota(jnp.int32, x.shape, 1)
    gathered = jnp.sum(jnp.where(col == t, x, 0.0), axis=-1, keepdims=True)
    logpt = gathered - lse                                # (TR, 1)

    loss = jnp.where(valid, _focal_from_logpt(logpt, gamma), 0.0)

    if per_row:
        out_ref[...] = loss                                           # (TR, 1)
    else:
        out_ref[...] = jnp.broadcast_to(jnp.sum(loss), (1, 8, 128))   # partial


def _pick_rows_tile(r, c, itemsize, vmem_limit, per_row):
    c_lane = _round_up(c, 128)
    vmem_budget = max(1 << 20, vmem_limit // 2)
    # Per-row VMEM bytes: double-buffered lane-padded logits + 512 B int32
    # target row (+ 512 B f32 output row for 'none') + ~3 f32 full-tile temps.
    per_row_bytes = (2 * (c_lane * itemsize + 512 + (512 if per_row else 0))
                     + 3 * c_lane * 4)
    tr_vmem = _round_down(max(8, vmem_budget // per_row_bytes), 8)
    tr_hbm = _round_down(max(8, _HBM_TILE_BYTES // max(1, c * itemsize)), 8)
    tr = max(8, min(tr_vmem, tr_hbm))
    return r if r <= tr else tr


def _focal_loss_rows(logits, target, gamma, reduction, per_row, tile_rows=None):
    r, c = int(logits.shape[0]), int(logits.shape[1])
    t = target.reshape(r, 1).astype(jnp.int32)
    itemsize = logits.dtype.itemsize
    vmem_limit = _vmem_limit_bytes()

    if tile_rows is None:
        tr = _pick_rows_tile(r, c, itemsize, vmem_limit, per_row)
    else:
        tr = max(8, _round_down(int(tile_rows), 8))
        if r <= tr:
            tr = r
    nt = -(-r // tr)

    kernel = functools.partial(_focal_loss_rows_kernel, gamma=gamma, n_rows=r,
                               tile_rows=tr, per_row=per_row)
    params = pltpu.CompilerParams(dimension_semantics=("parallel",),
                                  vmem_limit_bytes=vmem_limit)
    in_specs = [
        pl.BlockSpec((tr, c), lambda i: (i, 0)),
        pl.BlockSpec((tr, 1), lambda i: (i, 0)),
    ]

    if per_row:
        out = pl.pallas_call(
            kernel,
            out_shape=jax.ShapeDtypeStruct((r, 1), jnp.float32),
            grid_spec=pltpu.PrefetchScalarGridSpec(
                num_scalar_prefetch=0, grid=(nt,), in_specs=in_specs,
                out_specs=pl.BlockSpec((tr, 1), lambda i: (i, 0))),
            compiler_params=params,
        )(logits, t)
        return out[:, 0]

    partials = pl.pallas_call(
        kernel,
        out_shape=jax.ShapeDtypeStruct((nt, 8, 128), jnp.float32),
        grid_spec=pltpu.PrefetchScalarGridSpec(
            num_scalar_prefetch=0, grid=(nt,), in_specs=in_specs,
            out_specs=pl.BlockSpec((1, 8, 128), lambda i: (i, 0, 0))),
        compiler_params=params,
    )(logits, t)
    total = jnp.sum(partials[:, 0, 0])
    return total / r if reduction == "mean" else total


# --------------------------------------------------------------------------
# Kernel B: NCHW(-like) logits (N, C, HW) handled natively — classes on the
# sublane axis, spatial on the lane axis. No wrapper transpose, lane-dense
# targets, lane-dense per-pixel output for reduction='none'.
# --------------------------------------------------------------------------
def _focal_loss_nchw_kernel(x_ref, t_ref, out_ref, *, gamma, hw, tile_hw,
                            per_row):
    j = pl.program_id(1)

    x = x_ref[...].astype(jnp.float32)                    # (BN, C, THW)
    t = t_ref[...]                                        # (BN, 1, THW) int32

    # Spatial-column validity for the ragged last tile.
    col = j * tile_hw + jax.lax.broadcasted_iota(jnp.int32, (1, 1, tile_hw), 2)
    valid = col < hw                                      # (1, 1, THW)

    # log_softmax along the class (sublane) axis.
    m = jnp.max(x, axis=1, keepdims=True)                 # (BN, 1, THW)
    lse = jnp.log(jnp.sum(jnp.exp(x - m), axis=1, keepdims=True)) + m
    cls = jax.lax.broadcasted_iota(jnp.int32, x.shape, 1)
    gathered = jnp.sum(jnp.where(cls == t, x, 0.0), axis=1, keepdims=True)
    logpt = gathered - lse                                # (BN, 1, THW)

    loss = jnp.where(valid, _focal_from_logpt(logpt, gamma), 0.0)

    if per_row:
        out_ref[...] = loss                               # lane-dense (BN,1,THW)
    else:
        out_ref[...] = jnp.broadcast_to(jnp.sum(loss), (1, 1, 8, 128))


def _pick_nchw_tile(n, c, hw, itemsize, vmem_limit, per_row):
    c_sub = _round_up(c, 8)
    vmem_budget = max(1 << 20, vmem_limit // 2)
    # VMEM bytes per spatial lane: double-buffered (sublane-padded) logits +
    # int32 targets (+ f32 per-pixel out for 'none') + ~3 f32 full-tile temps.
    per_lane = (2 * (c_sub * itemsize + 8 * 4 + (8 * 4 if per_row else 0))
                + 3 * c_sub * 4)
    thw_vmem = _round_down(max(128, vmem_budget // per_lane), 128)
    thw_hbm = _round_down(max(128, _HBM_TILE_BYTES // max(1, c * itemsize)), 128)
    thw = min(thw_vmem, thw_hbm)
    if hw <= thw:
        thw = hw
        hw_pad = _round_up(hw, 128)
        bn = min(n,
                 max(1, vmem_budget // max(1, per_lane * hw_pad)),
                 max(1, _HBM_TILE_BYTES // max(1, c * hw * itemsize)))
        while n % bn:   # keep bn a divisor of N so the batch axis is never ragged
            bn -= 1
        return bn, thw
    return 1, thw


def _focal_loss_nchw(logits, target, gamma, reduction, per_row, tile_hw=None):
    n, c = int(logits.shape[0]), int(logits.shape[1])
    hw = 1
    for d in logits.shape[2:]:
        hw *= int(d)

    x = logits.reshape(n, c, hw)                     # free (contiguous) reshape
    t = target.reshape(n, 1, hw).astype(jnp.int32)   # free reshape
    itemsize = logits.dtype.itemsize
    vmem_limit = _vmem_limit_bytes()

    if tile_hw is None:
        bn, thw = _pick_nchw_tile(n, c, hw, itemsize, vmem_limit, per_row)
    else:
        thw = hw if int(tile_hw) >= hw else max(128, _round_down(int(tile_hw), 128))
        bn = 1
    nb = n // bn
    nhw = -(-hw // thw)

    kernel = functools.partial(_focal_loss_nchw_kernel, gamma=gamma, hw=hw,
                               tile_hw=thw, per_row=per_row)
    params = pltpu.CompilerParams(dimension_semantics=("parallel", "parallel"),
                                  vmem_limit_bytes=vmem_limit)
    in_specs = [
        pl.BlockSpec((bn, c, thw), lambda i, j: (i, 0, j)),
        pl.BlockSpec((bn, 1, thw), lambda i, j: (i, 0, j)),
    ]

    if per_row:
        out = pl.pallas_call(
            kernel,
            out_shape=jax.ShapeDtypeStruct((n, 1, hw), jnp.float32),
            grid_spec=pltpu.PrefetchScalarGridSpec(
                num_scalar_prefetch=0, grid=(nb, nhw), in_specs=in_specs,
                out_specs=pl.BlockSpec((bn, 1, thw), lambda i, j: (i, 0, j))),
            compiler_params=params,
        )(x, t)
        return out.reshape(-1)                 # PyTorch returns the flat vector

    partials = pl.pallas_call(
        kernel,
        out_shape=jax.ShapeDtypeStruct((nb, nhw, 8, 128), jnp.float32),
        grid_spec=pltpu.PrefetchScalarGridSpec(
            num_scalar_prefetch=0, grid=(nb, nhw), in_specs=in_specs,
            out_specs=pl.BlockSpec((1, 1, 8, 128), lambda i, j: (i, j, 0, 0))),
        compiler_params=params,
    )(x, t)
    total = jnp.sum(partials[:, :, 0, 0])
    return total / (n * hw) if reduction == "mean" else total


# --------------------------------------------------------------------------
# Public wrapper matching FocalLoss.forward
# --------------------------------------------------------------------------
def focal_loss(logits, target, gamma=0.0, reduction="mean", *,
               tile_rows=None, tile_hw=None):
    """Pallas implementation of FocalLoss.forward.

    logits: (N, C) or (N, C, H, W)/(N, C, L) float array (PyTorch NCHW layout)
    target: integer class indices, flattenable to (N[*H*W],)
    """
    gamma = float(gamma)
    per_row = reduction not in ("mean", "sum")
    if logits.ndim > 2:
        return _focal_loss_nchw(logits, target, gamma, reduction, per_row,
                                tile_hw=tile_hw)
    return _focal_loss_rows(logits, target, gamma, reduction, per_row,
                            tile_rows=tile_rows)


def _ref_focal_loss(logits, target, gamma=0.0, reduction="mean"):
    """Pure-JAX reference matching the PyTorch forward."""
    if logits.ndim > 2:
        n, c = logits.shape[0], logits.shape[1]
        x2 = logits.reshape(n, c, -1).transpose(0, 2, 1).reshape(-1, c)
    else:
        x2 = logits
    t = target.reshape(-1)
    logp = jax.nn.log_softmax(x2.astype(jnp.float32), axis=-1)
    logpt = jnp.take_along_axis(logp, t[:, None].astype(jnp.int32), axis=1)[:, 0]
    pt = jnp.exp(logpt)
    loss = -((1.0 - pt) ** gamma) * logpt
    if reduction == "mean":
        return loss.mean()
    if reduction == "sum":
        return loss.sum()
    return loss


if __name__ == "__main__":
    key = jax.random.PRNGKey(0)
    k1, k2, k3, k4, k5, k6 = jax.random.split(key, 6)
    checks = []

    # 1) NCHW logits + integer target map (the module's implied shapes),
    #    auto tiling (single step here), all gamma / reduction fast paths.
    N, C, H, W = 2, 4, 16, 16
    x = jax.random.normal(k1, (N, C, H, W), dtype=jnp.float32)
    tgt = jax.random.randint(k2, (N, H, W), 0, C, dtype=jnp.int32)
    for gamma, red in [(0.0, "mean"), (2.0, "mean"), (2.0, "sum"),
                       (2.0, "none"), (1.5, "mean")]:
        out = jax.block_until_ready(focal_loss(x, tgt, gamma=gamma, reduction=red))
        ref = _ref_focal_loss(x, tgt, gamma=gamma, reduction=red)
        checks.append(bool(jnp.allclose(out, ref, rtol=1e-5, atol=1e-5)))

    # 2) NCHW with ragged spatial tiling: HW=289, tile_hw=128 -> 3 tiles/sample,
    #    exercising the in-kernel column masking and the partial-sum output.
    x2 = jax.random.normal(k3, (2, 4, 17, 17), dtype=jnp.float32)
    t2 = jax.random.randint(k4, (2, 17, 17), 0, 4, dtype=jnp.int32)
    for red in ("mean", "none"):
        out = jax.block_until_ready(
            focal_loss(x2, t2, gamma=2.0, reduction=red, tile_hw=128))
        ref = _ref_focal_loss(x2, t2, gamma=2.0, reduction=red)
        checks.append(bool(jnp.allclose(out, ref, rtol=1e-5, atol=1e-5)))

    # 3) Plain 2-D classification logits, ragged row tiling (300 rows, tile 128).
    x3 = jax.random.normal(k5, (300, 10), dtype=jnp.float32)
    t3 = jax.random.randint(k6, (300,), 0, 10, dtype=jnp.int32)
    for red in ("mean", "sum", "none"):
        out = jax.block_until_ready(
            focal_loss(x3, t3, gamma=2.0, reduction=red, tile_rows=128))
        ref = _ref_focal_loss(x3, t3, gamma=2.0, reduction=red)
        checks.append(bool(jnp.allclose(out, ref, rtol=1e-5, atol=1e-5)))

    # 4) bf16 logits exercise the dtype-aware tile sizing (f32 math in-kernel).
    xb = x.astype(jnp.bfloat16)
    out = jax.block_until_ready(focal_loss(xb, tgt, gamma=2.0, reduction="mean"))
    ref = _ref_focal_loss(xb, tgt, gamma=2.0, reduction="mean")
    checks.append(bool(jnp.allclose(out, ref, rtol=1e-4, atol=1e-5)))

    assert all(checks), f"mismatch vs reference: {checks}"
    print("KERNEL_OK")
</pallas_src>

<mosaic_0001>
module attributes {stable_mosaic.version = 11 : i64} {
  func.func @_focal_loss_nchw_kernel(%arg0: i32, %arg1: i32, %arg2: memref<2x4x256xf32, #tpu.memory_space<vmem>>, %arg3: memref<2x1x256xi32, #tpu.memory_space<vmem>>, %arg4: memref<1x1x8x128xf32, #tpu.memory_space<vmem>>) attributes {dimension_semantics = [#tpu.dimension_semantics<parallel>, #tpu.dimension_semantics<parallel>], iteration_bounds = array<i64: 1, 1>, scalar_prefetch = 0 : i64, scratch_operands = 0 : i64, tpu.core_type = #tpu.core_type<tc>, window_params = [{transform_indices = @transform_0, window_bounds = array<i64: 2, 4, 256>}, {transform_indices = @transform_1, window_bounds = array<i64: 2, 1, 256>}, {transform_indices = @transform_2, window_bounds = array<i64: 1, 1, 8, 128>}]} {
    %c0 = arith.constant 0 : index
    %c0_0 = arith.constant 0 : index
    %c0_1 = arith.constant 0 : index
    %0 = vector.load %arg2[%c0, %c0_0, %c0_1] : memref<2x4x256xf32, #tpu.memory_space<vmem>>, vector<2x4x256xf32>
    %c0_2 = arith.constant 0 : index
    %c0_3 = arith.constant 0 : index
    %c0_4 = arith.constant 0 : index
    %1 = vector.load %arg3[%c0_2, %c0_3, %c0_4] : memref<2x1x256xi32, #tpu.memory_space<vmem>>, vector<2x1x256xi32>
    %c256_i32 = arith.constant 256 : i32
    %2 = arith.muli %arg1, %c256_i32 : i32
    %3 = tpu.iota {dimensions = array<i32: 2>} : vector<1x1x256xi32>
    %4 = vector.broadcast %2 : i32 to vector<1x1x256xi32>
    %5 = arith.addi %4, %3 : vector<1x1x256xi32>
    %c256_i32_5 = arith.constant 256 : i32
    %6 = vector.broadcast %c256_i32_5 : i32 to vector<1x1x256xi32>
    %7 = arith.cmpi slt, %5, %6 : vector<1x1x256xi32>
    %cst = arith.constant dense<0xFF800000> : vector<2x256xf32>
    %8 = vector.multi_reduction <maximumf>, %0, %cst [1] : vector<2x4x256xf32> to vector<2x256xf32>
    %9 = vector.shape_cast %8 : vector<2x256xf32> to vector<2x1x256xf32>
    %10 = vector.broadcast %9 : vector<2x1x256xf32> to vector<2x4x256xf32>
    %11 = arith.subf %0, %10 : vector<2x4x256xf32>
    %12 = math.exp %11 : vector<2x4x256xf32>
    %cst_6 = arith.constant dense<0.000000e+00> : vector<2x256xf32>
    %13 = vector.multi_reduction <add>, %12, %cst_6 [1] : vector<2x4x256xf32> to vector<2x256xf32>
    %14 = vector.shape_cast %13 : vector<2x256xf32> to vector<2x1x256xf32>
    %15 = math.log %14 : vector<2x1x256xf32>
    %16 = arith.addf %15, %9 : vector<2x1x256xf32>
    %17 = tpu.iota {dimensions = array<i32: 1>} : vector<2x4x256xi32>
    %18 = vector.broadcast %1 : vector<2x1x256xi32> to vector<2x4x256xi32>
    %19 = arith.cmpi eq, %17, %18 : vector<2x4x256xi32>
    %cst_7 = arith.constant 0.000000e+00 : f32
    %20 = vector.broadcast %cst_7 : f32 to vector<2x4x256xf32>
    %21 = arith.select %19, %0, %20 : vector<2x4x256xi1>, vector<2x4x256xf32>
    %cst_8 = arith.constant dense<0.000000e+00> : vector<2x256xf32>
    %22 = vector.multi_reduction <add>, %21, %cst_8 [1] : vector<2x4x256xf32> to vector<2x256xf32>
    %23 = vector.shape_cast %22 : vector<2x256xf32> to vector<2x1x256xf32>
    %24 = arith.subf %23, %16 : vector<2x1x256xf32>
    %cst_9 = arith.constant 0.000000e+00 : f32
    %25 = vector.broadcast %cst_9 : f32 to vector<2x1x256xf32>
    %26 = arith.subf %25, %24 : vector<2x1x256xf32>
    %cst_10 = arith.constant 0.000000e+00 : f32
    %27 = vector.shape_cast %7 : vector<1x1x256xi1> to vector<1x1x256xi1>
    %28 = vector.broadcast %27 : vector<1x1x256xi1> to vector<2x1x256xi1>
    %29 = vector.broadcast %cst_10 : f32 to vector<2x1x256xf32>
    %30 = arith.select %28, %26, %29 : vector<2x1x256xi1>, vector<2x1x256xf32>
    %31 = vector.shape_cast %30 : vector<2x1x256xf32> to vector<1x2x1x256xf32>
    %cst_11 = arith.constant dense<0.000000e+00> : vector<1xf32>
    %32 = vector.multi_reduction <add>, %31, %cst_11 [1, 2, 3] : vector<1x2x1x256xf32> to vector<1xf32>
    %33 = vector.shape_cast %32 : vector<1xf32> to vector<1x1x1x1xf32>
    %34 = vector.extract %33[0, 0, 0, 0] : f32 from vector<1x1x1x1xf32>
    %35 = vector.broadcast %34 : f32 to vector<1x1x8x128xf32>
    %c0_12 = arith.constant 0 : index
    %c0_13 = arith.constant 0 : index
    %c0_14 = arith.constant 0 : index
    %c0_15 = arith.constant 0 : index
    %36 = vector.load %arg4[%c0_12, %c0_13, %c0_14, %c0_15] : memref<1x1x8x128xf32, #tpu.memory_space<vmem>>, vector<1x1x8x128xf32>
    tpu.vector_store %arg4[%c0_12, %c0_13, %c0_14, %c0_15], %35 {strides = array<i32>} : memref<1x1x8x128xf32, #tpu.memory_space<vmem>>, vector<1x1x8x128xf32>,
    return
  }
  func.func @transform_0(%arg0: i32, %arg1: i32) -> (i32, i32, i32) {
    %c0_i32 = arith.constant 0 : i32
    %c0_i32_0 = arith.constant 0 : i32
    return %arg0, %c0_i32, %arg1 : i32, i32, i32
  }
  func.func @transform_1(%arg0: i32, %arg1: i32) -> (i32, i32, i32) {
    %c0_i32 = arith.constant 0 : i32
    %c0_i32_0 = arith.constant 0 : i32
    return %arg0, %c0_i32, %arg1 : i32, i32, i32
  }
  func.func @transform_2(%arg0: i32, %arg1: i32) -> (i32, i32, i32, i32) {
    %c0_i32 = arith.constant 0 : i32
    %c0_i32_0 = arith.constant 0 : i32
    %c0_i32_1 = arith.constant 0 : i32
    return %arg0, %arg1, %c0_i32, %c0_i32_0 : i32, i32, i32, i32
  }
}

</mosaic_0001>

<bundles_post_ra>
// kernel: tpu_custom_call.1
= control target key start
LH: loop header
LB: loop body
LE: loop exit
PB: predicated region body
PF: predicated region fallthrough
CT: control target
= control target key end

     0   :  { %7 = vsyncpa [#allocation3], 0  ;;  %s468_s0 = inlined_call_operand.hbm [shape: f32[2,4,256], index: 0, kind: input, shape index: {}]   ;;  %s469_s1 = inlined_call_operand.hbm [shape: s32[2,1,256], index: 1, kind: input, shape index: {}]   ;;  %s470_s2 = inlined_call_operand.hbm [shape: f32[1,1,8,128], index: 2, kind: output, shape index: {}]  }
   0x1   :  { %8 = vsyncpa [#allocation6], 0 }
   0x2   :  { %9 = vsyncpa [#allocation4], 0  ;;  %s14_s11 = sshll.u32 %s468_s0, 4  ;;  %s373_s12 = smov [#allocation2]   ;;  %s15_s11 = int_to_ptr.hbm [resolvable:$true] %s14_s11 }
   0x3   :  { %s16_s13 = sshll.u32 %s373_s12, 4  ;;  %s27_s16 = sshll.u32 %s469_s1, 4  ;;  %s17_s13 = int_to_ptr.vmem [resolvable:$true] %s16_s13  ;;  %s28_s16 = int_to_ptr.hbm [resolvable:$true] %s27_s16 }
   0x4   :  { %s374_s17 = smov 128   ;;  %s375_s18 = smov 8  }
   0x5   :  { %22 = dma.hbm_to_vmem [thread:$0]  %s15_s11, 256, %s17_s13, [#allocation3], %s374_s17, %s374_s17, %s375_s18  }
   0x6   :  { %s376_s19 = smov [#allocation5]   ;;  %s377_s21 = smov 32  }
   0x7   :  { %s29_s20 = sshll.u32 %s376_s19, 4  ;;  %s378_s22 = smov 2   ;;  %s30_s20 = int_to_ptr.vmem [resolvable:$true] %s29_s20 }
   0x8   :  { %35 = dma.hbm_to_vmem [thread:$0]  %s28_s16, 64, %s30_s20, [#allocation6], %s377_s21, %s377_s21, %s378_s22  }
   0x9   :  { %367 = dma.done.wait [#allocation3], 256  }
   0xa   :  { %368 = vsyncadd [#allocation3], 4294967040 }
   0xb   :  { %369 = dma.done.wait [#allocation6], 64  }
   0xc   :  { %370 = vsyncadd [#allocation6], 4294967232  ;;  %v401_v0 = vld [vmem:[#allocation2] sm:$0xff]  ;;  %v403_v1 = vld [vmem:[#allocation2 + $0x8] sm:$0xff]  ;;  %vm70_vm0 = vcmask 1043456   ;;  %v168_v44 = vlaneseq  ;;  %vm237_vm5 = vcmask 1040384  }
   0xd   :  { %59 = vst [vmem:[#allocation1] ss:$2 sm:$0xff] %v401_v0  ;;  %v46_v45 = vld [vmem:[#allocation5] sm:$0x3]  ;;  %v47_v46 = vld [vmem:[#allocation5 + $0x2] sm:$0x3] }
   0xe   :  { %63 = vst [vmem:[#allocation1 + $0x10] ss:$2 sm:$0xff] %v403_v1  ;;  %v169_v47 = vshrl.u32 %v168_v44, 7  ;;  %v170_v60 = vperm.slane %v46_v45, 0  ;;  %v171_v61 = vperm.slane %v46_v45, 1  ;;  %v172_v62 = vperm.slane %v47_v46, 0 }
   0xf   :  { %v173_v63 = vperm.slane %v47_v46, 1  ;;  %s379_s0 = smov [#allocation7]   ;;  %s263_s25 = sshll.u32 %s470_s2, 4  ;;  %s264_s25 = int_to_ptr.hbm [resolvable:$true] %s263_s25 }
  0x10   :  { %vm433_vm1 = vcmp.eq.s32.totalorder %v169_v47, %v170_v60  ;;  %vm437_vm2 = vcmp.eq.s32.totalorder %v169_v47, %v171_v61  ;;  %vm441_vm3 = vcmp.eq.s32.totalorder %v169_v47, %v172_v62  ;;  %s261_s1 = sshll.u32 %s379_s0, 4  ;;  %s262_s1 = int_to_ptr.vmem [resolvable:$true] %s261_s1 }
  0x11   :  { %vm445_vm4 = vcmp.eq.s32.totalorder %v169_v47, %v173_v63 }
  0x14   :  { %v60_v2 = vld.sshfl [vmem:[#allocation1] sm:$0xff pattern:$0x75316420]  ;;  %v61_v3 = vld.sshfl [vmem:[#allocation1 + $0x8] sm:$0xff pattern:$0x75316420] }
  0x15   :  { %v64_v4 = vld.sshfl [vmem:[#allocation1 + $0x10] sm:$0xff pattern:$0x75316420]  ;;  %v65_v5 = vld.sshfl [vmem:[#allocation1 + $0x18] sm:$0xff pattern:$0x75316420] }
  0x16   :  { %v71_v6 = vsel %vm70_vm0, %v60_v2, -inf  ;;  %v78_v7 = vsel %vm70_vm0, %v61_v3, -inf  ;;  %v85_v8 = vsel %vm70_vm0, %v64_v4, -inf  ;;  %v92_v9 = vsel %vm70_vm0, %v65_v5, -inf }
  0x17   :  { %v72_v10 = vrot.slane %v71_v6, 4  ;;  %v79_v11 = vrot.slane %v78_v7, 4  ;;  %v86_v12 = vrot.slane %v85_v8, 4  ;;  %v93_v13 = vrot.slane %v92_v9, 4 }
  0x19   :  { %v73_v14 = vmax.f32 %v71_v6, %v72_v10  ;;  %v80_v15 = vmax.f32 %v78_v7, %v79_v11  ;;  %v87_v16 = vmax.f32 %v85_v8, %v86_v12  ;;  %v94_v17 = vmax.f32 %v92_v9, %v93_v13 }
  0x1b   :  { %v74_v18 = vrot.slane %v73_v14, 2  ;;  %v81_v19 = vrot.slane %v80_v15, 2  ;;  %v88_v20 = vrot.slane %v87_v16, 2  ;;  %v95_v21 = vrot.slane %v94_v17, 2 }
  0x1d   :  { %v75_v22 = vmax.f32 %v73_v14, %v74_v18  ;;  %v82_v23 = vmax.f32 %v80_v15, %v81_v19  ;;  %v89_v24 = vmax.f32 %v87_v16, %v88_v20  ;;  %v96_v25 = vmax.f32 %v94_v17, %v95_v21 }
  0x1f   :  { %v76_v26 = vrot.slane %v75_v22, 1  ;;  %v83_v27 = vrot.slane %v82_v23, 1  ;;  %v90_v28 = vrot.slane %v89_v24, 1  ;;  %v97_v29 = vrot.slane %v96_v25, 1 }
  0x21   :  { %v411_v30 = vmax.f32 %v75_v22, %v76_v26  ;;  %v413_v31 = vmax.f32 %v82_v23, %v83_v27  ;;  %v415_v32 = vmax.f32 %v89_v24, %v90_v28  ;;  %v417_v33 = vmax.f32 %v96_v25, %v97_v29 }
  0x23   :  { %v103_v34 = vrot.slane %v413_v31, 4  ;;  %v104_v35 = vrot.slane %v417_v33, 4 }
  0x25   :  { %v105_v36 = vsel %vm70_vm0, %v411_v30, %v103_v34  ;;  %v106_v37 = vsel %vm70_vm0, %v415_v32, %v104_v35 }
  0x26   :  { %v109_v38 = vsub.f32 %v401_v0, %v105_v36  ;;  %v110_v39 = vsub.f32 %v403_v1, %v106_v37 }
  0x28   :  { %v111_v40 = vmul.f32 1.442695, %v109_v38  ;;  %v113_v41 = vmul.f32 1.442695, %v110_v39 }
  0x2a   :  { %283 = vpow2.f32 %v111_v40 }
  0x2b   :  { %285 = vpow2.f32 %v113_v41 }
  0x30   :  { %v284_v42 = vpop.eup %283 }
  0x31   :  { %v286_v43 = vpop.eup %285  ;;  %117 = vst [vmem:[#allocation1] ss:$2 sm:$0xff] %v284_v42 }
  0x32   :  { %121 = vst [vmem:[#allocation1 + $0x10] ss:$2 sm:$0xff] %v286_v43 }
  0x38   :  { %v118_v48 = vld.sshfl [vmem:[#allocation1] sm:$0xff pattern:$0x75316420]  ;;  %v119_v49 = vld.sshfl [vmem:[#allocation1 + $0x8] sm:$0xff pattern:$0x75316420] }
  0x39   :  { %v122_v50 = vld.sshfl [vmem:[#allocation1 + $0x10] sm:$0xff pattern:$0x75316420]  ;;  %v123_v51 = vld.sshfl [vmem:[#allocation1 + $0x18] sm:$0xff pattern:$0x75316420] }
  0x3a   :  { %v128_v52 = vsel %vm70_vm0, %v118_v48, 0.0  ;;  %v135_v53 = vsel %vm70_vm0, %v119_v49, 0.0  ;;  %v142_v54 = vsel %vm70_vm0, %v122_v50, 0.0  ;;  %v149_v55 = vsel %vm70_vm0, %v123_v51, 0.0  ;;  %178 = vst [vmem:[#allocation1] ss:$2 sm:$0xff] %v401_v0 }
  0x3b   :  { %v129_v56 = vrot.slane %v128_v52, 4  ;;  %v136_v57 = vrot.slane %v135_v53, 4  ;;  %v143_v58 = vrot.slane %v142_v54, 4  ;;  %v150_v59 = vrot.slane %v149_v55, 4  ;;  %182 = vst [vmem:[#allocation1 + $0x10] ss:$2 sm:$0xff] %v403_v1 }
  0x3d   :  { %v130_v2 = vadd.f32 %v129_v56, %v128_v52  ;;  %v137_v3 = vadd.f32 %v136_v57, %v135_v53  ;;  %v144_v4 = vadd.f32 %v143_v58, %v142_v54  ;;  %v151_v5 = vadd.f32 %v150_v59, %v149_v55 }
  0x3f   :  { %v131_v6 = vrot.slane %v130_v2, 2  ;;  %v138_v7 = vrot.slane %v137_v3, 2  ;;  %v145_v8 = vrot.slane %v144_v4, 2  ;;  %v152_v9 = vrot.slane %v151_v5, 2 }
  0x41   :  { %v132_v12 = vadd.f32 %v131_v6, %v130_v2  ;;  %v139_v13 = vadd.f32 %v138_v7, %v137_v3  ;;  %v146_v14 = vadd.f32 %v145_v8, %v144_v4  ;;  %v153_v15 = vadd.f32 %v152_v9, %v151_v5  ;;  %v179_v16 = vld.sshfl [vmem:[#allocation1] sm:$0xff pattern:$0x75316420]  ;;  %v180_v17 = vld.sshfl [vmem:[#allocation1 + $0x8] sm:$0xff pattern:$0x75316420] }
  0x42   :  { %v183_v18 = vld.sshfl [vmem:[#allocation1 + $0x10] sm:$0xff pattern:$0x75316420]  ;;  %v184_v19 = vld.sshfl [vmem:[#allocation1 + $0x18] sm:$0xff pattern:$0x75316420] }
  0x43   :  { %v133_v20 = vrot.slane %v132_v12, 1  ;;  %v140_v21 = vrot.slane %v139_v13, 1  ;;  %v147_v22 = vrot.slane %v146_v14, 1  ;;  %v154_v23 = vrot.slane %v153_v15, 1 }
  0x44   :  { %v189_v24 = vsel %vm433_vm1, %v179_v16, 0.0  ;;  %v190_v25 = vsel %vm437_vm2, %v180_v17, 0.0  ;;  %v191_v26 = vsel %vm441_vm3, %v183_v18, 0.0  ;;  %v192_v27 = vsel %vm445_vm4, %v184_v19, 0.0 }
  0x45   :  { %v134_v28 = vadd.f32 %v133_v20, %v132_v12  ;;  %v141_v29 = vadd.f32 %v140_v21, %v139_v13  ;;  %v148_v34 = vadd.f32 %v147_v22, %v146_v14  ;;  %v155_v35 = vadd.f32 %v154_v23, %v153_v15 }
  0x46   :  { %v193_v36 = vsel %vm70_vm0, %v189_v24, 0.0  ;;  %v200_v37 = vsel %vm70_vm0, %v190_v25, 0.0  ;;  %v207_v38 = vsel %vm70_vm0, %v191_v26, 0.0  ;;  %v214_v39 = vsel %vm70_vm0, %v192_v27, 0.0 }
  0x47   :  { %287 = vlog2.f32 %v134_v28  ;;  %v194_v40 = vrot.slane %v193_v36, 4  ;;  %v201_v41 = vrot.slane %v200_v37, 4  ;;  %v208_v42 = vrot.slane %v207_v38, 4 }
  0x48   :  { %289 = vlog2.f32 %v141_v29  ;;  %v215_v43 = vrot.slane %v214_v39, 4 }
  0x49   :  { %291 = vlog2.f32 %v148_v34  ;;  %v195_v44 = vadd.f32 %v194_v40, %v193_v36  ;;  %v202_v45 = vadd.f32 %v201_v41, %v200_v37  ;;  %v209_v46 = vadd.f32 %v208_v42, %v207_v38 }
  0x4a   :  { %293 = vlog2.f32 %v155_v35  ;;  %v216_v47 = vadd.f32 %v215_v43, %v214_v39 }
  0x4b   :  { %v196_v48 = vrot.slane %v195_v44, 2  ;;  %v203_v49 = vrot.slane %v202_v45, 2  ;;  %v210_v50 = vrot.slane %v209_v46, 2 }
  0x4c   :  { %v217_v51 = vrot.slane %v216_v47, 2 }
  0x4d   :  { %v288_v52 = vpop.eup %287  ;;  %v197_v53 = vadd.f32 %v196_v48, %v195_v44  ;;  %v204_v54 = vadd.f32 %v203_v49, %v202_v45  ;;  %v211_v55 = vadd.f32 %v210_v50, %v209_v46 }
  0x4e   :  { %v290_v56 = vpop.eup %289  ;;  %v157_v57 = vmul.f32 0.6931472, %v288_v52  ;;  %v218_v58 = vadd.f32 %v217_v51, %v216_v47 }
  0x4f   :  { %v292_v59 = vpop.eup %291  ;;  %v159_v60 = vmul.f32 0.6931472, %v290_v56  ;;  %v198_v61 = vrot.slane %v197_v53, 1  ;;  %v205_v62 = vrot.slane %v204_v54, 1  ;;  %v212_v63 = vrot.slane %v211_v55, 1 }
  0x50   :  { %v294_v2 = vpop.eup %293  ;;  %v161_v3 = vmul.f32 0.6931472, %v292_v59  ;;  %v164_v4 = vadd.f32 %v157_v57, %v411_v30  ;;  %v219_v5 = vrot.slane %v218_v58, 1 }
  0x51   :  { %v163_v6 = vmul.f32 0.6931472, %v294_v2  ;;  %v165_v7 = vadd.f32 %v159_v60, %v413_v31  ;;  %v199_v8 = vadd.f32 %v198_v61, %v197_v53  ;;  %v206_v9 = vadd.f32 %v205_v62, %v204_v54 }
  0x52   :  { %v166_v0 = vadd.f32 %v161_v3, %v415_v32  ;;  %v213_v10 = vadd.f32 %v212_v63, %v211_v55  ;;  %v220_v1 = vadd.f32 %v219_v5, %v218_v58 }
  0x53   :  { %v167_v11 = vadd.f32 %v163_v6, %v417_v33  ;;  %v221_v12 = vsub.f32 %v199_v8, %v164_v4  ;;  %v222_v13 = vsub.f32 %v206_v9, %v165_v7 }
  0x54   :  { %v223_v14 = vsub.f32 %v213_v10, %v166_v0 }
  0x55   :  { %v224_v15 = vsub.f32 %v220_v1, %v167_v11  ;;  %v225_v16 = vsub.f32 0.0, %v221_v12  ;;  %v226_v17 = vsub.f32 0.0, %v222_v13 }
  0x56   :  { %v227_v30 = vsub.f32 0.0, %v223_v14 }
  0x57   :  { %v228_v18 = vsub.f32 0.0, %v224_v15  ;;  %v238_v19 = vsel %vm237_vm5, %v225_v16, 0.0  ;;  %v239_v20 = vsel %vm237_vm5, %v226_v17, 0.0 }
  0x58   :  { %v240_v31 = vadd.f32 %v239_v20, %v238_v19  ;;  %v241_v21 = vsel %vm237_vm5, %v227_v30, 0.0 }
  0x59   :  { %v243_v22 = vsel %vm237_vm5, %v228_v18, 0.0 }
  0x5a   :  { %v242_v23 = vadd.f32 %v241_v21, %v240_v31 }
  0x5c   :  { %v244_v32 = vadd.f32 %v243_v22, %v242_v23 }
  0x5e   :  { %245 = vadd.xlane.f32.xlu0 %v244_v32 }
  0xd1   :  { %v246_v24 = vpop.xlane.xlu0 %245 }
  0xd2   :  { %v247_v25 = vrot.slane %v246_v24, 4 }
  0xd4   :  { %v248_v33 = vadd.f32 %v247_v25, %v246_v24 }
  0xd6   :  { %v249_v26 = vrot.slane %v248_v33, 2 }
  0xd8   :  { %v250_v27 = vadd.f32 %v249_v26, %v248_v33 }
  0xda   :  { %v251_v28 = vrot.slane %v250_v27, 1 }
  0xdc   :  { %v252_v29 = vadd.f32 %v251_v28, %v250_v27 }
  0xde   :  { %274 = vpush %v252_v29 }
 0x10f   :  { %s275_s26 = spop %274 }
 0x110   :  { %v254_v34 = vstv %s275_s26 }
 0x111   :  { %255 = vst [vmem:[#allocation7] sm:$0xff] %v254_v34 }
 0x112   :  { %266 = dma.vmem_to_hbm [thread:$0]  %s262_s1, 128, %s264_s25, [#allocation4]  }
 0x113   :  { %371 = dma.done.wait [#allocation4], 128  }
 0x114   :  { %372 = vsyncadd [#allocation4], 4294967168 }
 0x115   :  { %271 = vsyncpa [#allocation3], 1 }
 0x116   :  { %272 = vsyncpa [#allocation6], 1 }
 0x117   :  { %273 = vsyncpa [#allocation4], 1 }

</bundles_post_ra>
